<compile_context>
chip_gen: v6e
topology: v6e:2x2x1
jax: 0.10.0
libtpu: 0.0.40
codegen_flags: <defaults>
</compile_context>

<pallas_src>
import numpy as np
import jax
import jax.numpy as jnp
from jax.experimental import pallas as pl
from jax.experimental.pallas import tpu as pltpu


def _convt1d_tanh_kernel(x_ref, w_ref, b_ref, o_ref, slab_ref):
    # x_ref : (TN, TL)       VMEM block of the (zero-extended) input
    # w_ref : (K,)           SMEM ConvTranspose1d taps
    # b_ref : (1,)           SMEM bias
    # o_ref : (TN, TL)       VMEM output block
    # slab_ref: (TN, TL+128) persistent VMEM scratch: [128-lane halo | x tile]
    K = w_ref.shape[0]
    TN, TL = o_ref.shape
    jt = pl.program_id(1)                     # L-tile index ("arbitrary" axis)

    # --- carry the K-1 lane left-halo from the previous L-tile (no extra HBM) ---
    # Before overwriting the slab, its columns [TL, TL+128) still hold the
    # previous tile's last 128 input columns.  Zero them at the start of each
    # row-tile's sweep (jt == 0).
    halo = slab_ref[:, TL:TL + 128]
    halo = jnp.where(jt == 0, jnp.zeros_like(halo), halo)
    slab_ref[:, 0:128] = halo                 # aligned store
    slab_ref[:, 128:128 + TL] = x_ref[...]    # aligned store

    # ConvTranspose1d(stride=1):  out[j] = b + sum_k x[j-k] * w[k]
    # (x zero-extended: left by the carried halo, right by the wrapper fill).
    acc = jnp.full((TN, TL), b_ref[0], dtype=jnp.float32)
    for k in range(K):                        # K static & tiny -> unrolled FMAs (VPU)
        acc = acc + slab_ref[:, 128 - k:128 - k + TL] * w_ref[k]

    # tanh on the EUP.  (v7x-only option if EUP ever binds: tanh in bf16.)
    o_ref[...] = jnp.tanh(acc).astype(o_ref.dtype)


@jax.jit
def conv_transpose1d_tanh(x, w, b):
    """x: (N, Cin, L), w: (Cin, Cout, K), b: (Cout,).  Cin = Cout = 1, stride = 1."""
    N, Cin, L = x.shape
    Cin_w, Cout, K = w.shape
    assert Cin == Cin_w == 1 and Cout == 1, "degenerate-channel VPU path"
    assert K - 1 <= 128, "halo carry holds at most 128 lanes"

    Lout = L + K - 1                                   # (L-1)*stride + K, stride=1

    # Lane tile: multiple of 128, capped at 1024 (85%+ of HBM roofline regime).
    TL = min(1024, ((Lout + 127) // 128) * 128)
    nL = (Lout + TL - 1) // TL
    Wout = nL * TL                                     # lane-dense gridded width
    # Sublane tile: multiple of 8 rows, capped at 256.
    TN = min(256, ((N + 7) // 8) * 8)
    Npad = ((N + TN - 1) // TN) * TN
    nN = Npad // TN

    # Single fused zero-fill (right/bottom only; the K-1 left halo is in-kernel).
    x2d = x.reshape(N, L).astype(jnp.float32)
    xin = jnp.pad(x2d, ((0, Npad - N), (0, Wout - L)))
    w_taps = w.reshape(K).astype(jnp.float32)          # (K,) -> SMEM scalars
    b_sc = b.reshape(Cout).astype(jnp.float32)         # (1,) -> SMEM scalar

    out = pl.pallas_call(
        _convt1d_tanh_kernel,
        out_shape=jax.ShapeDtypeStruct((Npad, Wout), jnp.float32),
        grid=(nN, nL),
        in_specs=[
            pl.BlockSpec((TN, TL), lambda i, j: (i, j)),              # x tile
            pl.BlockSpec(memory_space=pltpu.MemorySpace.SMEM),        # taps
            pl.BlockSpec(memory_space=pltpu.MemorySpace.SMEM),        # bias
        ],
        out_specs=pl.BlockSpec((TN, TL), lambda i, j: (i, j)),
        scratch_shapes=[pltpu.VMEM((TN, TL + 128), jnp.float32)],     # halo slab
        compiler_params=pltpu.CompilerParams(
            dimension_semantics=("parallel", "arbitrary")),
    )(xin, w_taps, b_sc)

    # Strip row/lane padding; never expose the padded region downstream.
    return out[:N, :Lout].reshape(N, Cout, Lout).astype(x.dtype)


def reference(x, w, b, stride=1):
    # scatter-style definition of ConvTranspose1d, then tanh
    x = np.asarray(x); w = np.asarray(w); b = np.asarray(b)
    N, Cin, L = x.shape
    _, Cout, K = w.shape
    Lout = (L - 1) * stride + K
    out = np.tile(b.reshape(1, Cout, 1), (N, 1, Lout)).astype(np.float64)
    for l in range(L):
        for k in range(K):
            out[:, :, l * stride + k] += np.einsum("ni,io->no", x[:, :, l], w[:, :, k])
    return np.tanh(out)


if __name__ == "__main__":
    # module config: in_channels=1, out_channels=1, kernel_size=3, stride=conv_dim=1
    in_channels, out_channels, kernel_size = 1, 1, 3
    N, L = 2, 16

    key = jax.random.PRNGKey(0)
    kx, kw, kb = jax.random.split(key, 3)

    x = jax.random.uniform(kx, (N, in_channels, L), dtype=jnp.float32)

    # deterministic parameter init, PyTorch-style uniform(-bound, bound)
    bound = 1.0 / np.sqrt(in_channels * kernel_size)
    w = jax.random.uniform(kw, (in_channels, out_channels, kernel_size),
                           minval=-bound, maxval=bound, dtype=jnp.float32)
    b = jax.random.uniform(kb, (out_channels,),
                           minval=-bound, maxval=bound, dtype=jnp.float32)

    out = conv_transpose1d_tanh(x, w, b)
    out = jax.block_until_ready(out)

    ref = reference(x, w, b, stride=1)
    np.testing.assert_allclose(np.asarray(out), ref, rtol=1e-5, atol=1e-5)

    print("KERNEL_OK")
</pallas_src>

<mosaic_0001>
module attributes {stable_mosaic.version = 11 : i64} {
  func.func @_convt1d_tanh_kernel(%arg0: i32, %arg1: i32, %arg2: memref<8x128xf32, #tpu.memory_space<vmem>>, %arg3: memref<3xf32, #tpu.memory_space<smem>>, %arg4: memref<1xf32, #tpu.memory_space<smem>>, %arg5: memref<8x128xf32, #tpu.memory_space<vmem>>, %arg6: memref<8x256xf32, #tpu.memory_space<vmem>>) attributes {dimension_semantics = [#tpu.dimension_semantics<parallel>, #tpu.dimension_semantics<arbitrary>], iteration_bounds = array<i64: 1, 1>, scalar_prefetch = 0 : i64, scratch_operands = 1 : i64, tpu.core_type = #tpu.core_type<tc>, window_params = [{transform_indices = @transform_0, window_bounds = array<i64: 8, 128>}, {transform_indices = @transform_1, window_bounds = array<i64: 3>}, {transform_indices = @transform_2, window_bounds = array<i64: 1>}, {transform_indices = @transform_3, window_bounds = array<i64: 8, 128>}]} {
    %c0 = arith.constant 0 : index
    %c128 = arith.constant 128 : index
    %0 = vector.load %arg6[%c0, %c128] : memref<8x256xf32, #tpu.memory_space<vmem>>, vector<8x128xf32>
    %c0_i32 = arith.constant 0 : i32
    %1 = arith.cmpi eq, %arg1, %c0_i32 : i32
    %cst = arith.constant 0.000000e+00 : f32
    %2 = vector.broadcast %cst : f32 to vector<8x128xf32>
    %3 = arith.select %1, %2, %0 : vector<8x128xf32>
    %c0_0 = arith.constant 0 : index
    %c0_1 = arith.constant 0 : index
    %4 = vector.load %arg6[%c0_0, %c0_1] : memref<8x256xf32, #tpu.memory_space<vmem>>, vector<8x128xf32>
    tpu.vector_store %arg6[%c0_0, %c0_1], %3 {strides = array<i32>} : memref<8x256xf32, #tpu.memory_space<vmem>>, vector<8x128xf32>,
    %c0_2 = arith.constant 0 : index
    %c0_3 = arith.constant 0 : index
    %5 = vector.load %arg2[%c0_2, %c0_3] : memref<8x128xf32, #tpu.memory_space<vmem>>, vector<8x128xf32>
    %c0_4 = arith.constant 0 : index
    %c128_5 = arith.constant 128 : index
    %6 = vector.load %arg6[%c0_4, %c128_5] : memref<8x256xf32, #tpu.memory_space<vmem>>, vector<8x128xf32>
    tpu.vector_store %arg6[%c0_4, %c128_5], %5 {strides = array<i32>} : memref<8x256xf32, #tpu.memory_space<vmem>>, vector<8x128xf32>,
    %c0_6 = arith.constant 0 : index
    %7 = memref.load %arg4[%c0_6] : memref<1xf32, #tpu.memory_space<smem>>
    %8 = vector.broadcast %7 : f32 to vector<8x128xf32>
    %c0_7 = arith.constant 0 : index
    %c128_8 = arith.constant 128 : index
    %9 = vector.load %arg6[%c0_7, %c128_8] : memref<8x256xf32, #tpu.memory_space<vmem>>, vector<8x128xf32>
    %c0_9 = arith.constant 0 : index
    %10 = memref.load %arg3[%c0_9] : memref<3xf32, #tpu.memory_space<smem>>
    %11 = vector.broadcast %10 : f32 to vector<8x128xf32>
    %12 = arith.mulf %9, %11 : vector<8x128xf32>
    %13 = arith.addf %8, %12 : vector<8x128xf32>
    %c0_10 = arith.constant 0 : index
    %c127 = arith.constant 127 : index
    %14 = vector.load %arg6[%c0_10, %c127] : memref<8x256xf32, #tpu.memory_space<vmem>>, vector<8x128xf32>
    %c1 = arith.constant 1 : index
    %15 = memref.load %arg3[%c1] : memref<3xf32, #tpu.memory_space<smem>>
    %16 = vector.broadcast %15 : f32 to vector<8x128xf32>
    %17 = arith.mulf %14, %16 : vector<8x128xf32>
    %18 = arith.addf %13, %17 : vector<8x128xf32>
    %c0_11 = arith.constant 0 : index
    %c126 = arith.constant 126 : index
    %19 = vector.load %arg6[%c0_11, %c126] : memref<8x256xf32, #tpu.memory_space<vmem>>, vector<8x128xf32>
    %c2 = arith.constant 2 : index
    %20 = memref.load %arg3[%c2] : memref<3xf32, #tpu.memory_space<smem>>
    %21 = vector.broadcast %20 : f32 to vector<8x128xf32>
    %22 = arith.mulf %19, %21 : vector<8x128xf32>
    %23 = arith.addf %18, %22 : vector<8x128xf32>
    %24 = math.tanh %23 : vector<8x128xf32>
    %c0_12 = arith.constant 0 : index
    %c0_13 = arith.constant 0 : index
    %25 = vector.load %arg5[%c0_12, %c0_13] : memref<8x128xf32, #tpu.memory_space<vmem>>, vector<8x128xf32>
    tpu.vector_store %arg5[%c0_12, %c0_13], %24 {strides = array<i32>} : memref<8x128xf32, #tpu.memory_space<vmem>>, vector<8x128xf32>,
    return
  }
  func.func @transform_0(%arg0: i32, %arg1: i32) -> (i32, i32) {
    %c0_i32 = arith.constant 0 : i32
    return %arg0, %arg1 : i32, i32
  }
  func.func @transform_1(%arg0: i32, %arg1: i32) -> i32 {
    %c0_i32 = arith.constant 0 : i32
    %c0_i32_0 = arith.constant 0 : i32
    return %c0_i32 : i32
  }
  func.func @transform_2(%arg0: i32, %arg1: i32) -> i32 {
    %c0_i32 = arith.constant 0 : i32
    %c0_i32_0 = arith.constant 0 : i32
    return %c0_i32 : i32
  }
  func.func @transform_3(%arg0: i32, %arg1: i32) -> (i32, i32) {
    %c0_i32 = arith.constant 0 : i32
    return %arg0, %arg1 : i32, i32
  }
}

</mosaic_0001>

<bundles_post_ra>
// kernel: conv_transpose1d_tanh.1
= control target key start
LH: loop header
LB: loop body
LE: loop exit
PB: predicated region body
PF: predicated region fallthrough
CT: control target
= control target key end

     0   :  { %9 = vsyncpa [#allocation5], 0  ;;  %s136_s0 = inlined_call_operand.vmem [shape: f32[8,128], index: 0, kind: input, shape index: {}]   ;;  %s137_s1 = inlined_call_operand.vmem [shape: f32[3], index: 1, kind: input, shape index: {}]   ;;  %s138_s2 = inlined_call_operand.<no memory space> [shape: f32[1], index: 2, kind: input, shape index: {}]   ;;  %s139_s3 = inlined_call_operand.vmem [shape: f32[8,128], index: 3, kind: output, shape index: {}]  }
   0x1   :  { %s18_s14 = sshll.u32 %s137_s1, 4  ;;  %s19_s14 = int_to_ptr.vmem [resolvable:$true] %s18_s14 }
   0x2   :  { %s87_s15 = scalar_lea.vmem %s19_s14, 16  ;;  %p92_p1 = scmp.lt.s32.totalorder %s19_s14, %s19_s14 }
   0x3   :  { %p88_p0 = scmp.ne.s32.totalorder %s19_s14, %s87_s15  ;;  %p93_p2 = scmp.lt.s32.totalorder %s87_s15, %s87_s15 }
   0x5   :  { %p94_p3 = por %p93_p2, %p92_p1 }
   0x7   :  { %p95_p4 = pnand %p94_p3, %p88_p0 }
   0x9   :  { %98 = shalt.err (!%p95_p4)
}
   0xa   :  { %s101_s16 = smov [#allocation4]  }
   0xb   :  { %21 = dma.vmem_to_smem %s19_s14, 16, %s101_s16, [#allocation5]  }
   0xc   :  { %99 = dma.done.wait [#allocation5], 16  }
   0xd   :  { %100 = vsyncadd [#allocation5], 4294967280 }
   0xe   :  { %27 = sfence }
   0xf   :  { %s81_s17 = sld [smem:[#allocation4 + $0x2]]  ;;  %v35_v1 = vld [vmem:[%s136_s0] sm:$0xff]  ;;  %s102_s1 = smov 2   ;;  %v38_v10 = vstv %s138_s2  ;;  %vm55_vm0 = vcmask 7168   ;;  %vm69_vm1 = vcmask 15360  }
  0x10   :  { %s80_s18 = sld [smem:[#allocation4 + $0x1]]  ;;  %s103_s21 = smov 1  }
  0x11   :  { %s40_s22 = sld [smem:[#allocation4]] }
  0x15   :  { %v60_v0 = vstv %s81_s17 }
  0x16   :  { %v61_v2 = vmul.f32 0.0, %v60_v0  ;;  %v46_v3 = vstv %s80_s18  ;;  %v62_v5 = vmul.f32 %v60_v0, %v35_v1 }
  0x17   :  { %v47_v4 = vmul.f32 0.0, %v46_v3  ;;  %v48_v6 = vmul.f32 %v46_v3, %v35_v1  ;;  %v41_v7 = vstv %s40_s22 }
  0x18   :  { %65 = vrot.lane.b32.xlu1 %v61_v2, %s102_s1  ;;  %v42_v8 = vmul.f32 %v41_v7, %v35_v1 }
  0x19   :  { %51 = vrot.lane.b32.xlu0 %v47_v4, %s103_s21 }
  0x1a   :  { %v43_v12 = vadd.f32 %v42_v8, %v38_v10 }
  0x1c   :  { %67 = vrot.lane.b32.xlu1 %v62_v5, %s102_s1 }
  0x1d   :  { %53 = vrot.lane.b32.xlu0 %v48_v6, %s103_s21 }
  0x8a   :  { %v66_v9 = vpop.permute.xlu1 %65 }
  0x8b   :  { %v52_v11 = vpop.permute.xlu0 %51 }
  0x8e   :  { %v68_v13 = vpop.permute.xlu1 %67 }
  0x8f   :  { %v54_v14 = vpop.permute.xlu0 %53  ;;  %v70_v17 = vsel %vm69_vm1, %v66_v9, %v68_v13 }
  0x90   :  { %v56_v15 = vsel %vm55_vm0, %v52_v11, %v54_v14 }
  0x91   :  { %v58_v16 = vadd.f32 %v56_v15, %v43_v12 }
  0x93   :  { %v72_v18 = vadd.f32 %v70_v17, %v58_v16 }
  0x95   :  { %85 = vtanh.f32 %v72_v18 }
  0xa2   :  { %v86_v19 = vpop.eup %85 }
  0xa3   :  { %74 = vst [vmem:[%s139_s3] sm:$0xff] %v86_v19 }
  0xa4   :  { %79 = vsyncpa [#allocation5], 1 }

</bundles_post_ra>
